<compile_context>
chip_gen: v6e
topology: v6e:2x2x1
jax: 0.10.0
libtpu: 0.0.40
codegen_flags: <defaults>
</compile_context>

<pallas_src>
import functools
import numpy as np
import jax
import jax.numpy as jnp
from jax.experimental import pallas as pl
from jax.experimental.pallas import tpu as pltpu


# ----------------------------------------------------------------------------
# Exact PyTorch bilinear (align_corners=False) interpolation matrix.
# ----------------------------------------------------------------------------
def _bilinear_matrix(out_size: int, in_size: int) -> np.ndarray:
    scale = in_size / out_size
    o = np.arange(out_size)
    src = (o + 0.5) * scale - 0.5
    src = np.maximum(src, 0.0)                      # PyTorch clamps negative source coords
    i0 = np.floor(src).astype(np.int64)
    i0 = np.minimum(i0, in_size - 1)
    i1 = np.minimum(i0 + 1, in_size - 1)
    frac = (src - i0).astype(np.float32)
    m = np.zeros((out_size, in_size), np.float32)
    m[o, i0] += (1.0 - frac)
    m[o, i1] += frac
    return m


def _tap_operator(k_mat: np.ndarray, hout: int, wout: int) -> np.ndarray:
    """Fold conv padding=1 and the nine 3x3 shifts into the bilinear operator.

    Returns A with shape (Hin*Win, 9*Hout*Wout) such that, per channel,
        (x_row @ A)[t*HW + p] == zero_padded_upsample(x)[h + dy, w + dx]
    for output position p = h*Wout + w and tap t = dy*3 + dx.
    """
    hw = hout * wout
    pos_h, pos_w = np.divmod(np.arange(hw), wout)
    a = np.zeros((k_mat.shape[1], 9 * hw), np.float32)
    for dy in range(3):
        for dx in range(3):
            t = dy * 3 + dx
            hh = pos_h + (dy - 1)
            ww = pos_w + (dx - 1)
            valid = (hh >= 0) & (hh < hout) & (ww >= 0) & (ww < wout)
            src = np.where(valid, hh * wout + ww, 0)
            tap = np.where(valid[:, None], k_mat[src, :], 0.0)   # (HW, Hin*Win)
            a[:, t * hw:(t + 1) * hw] = tap.T.astype(np.float32)
    return a


# ----------------------------------------------------------------------------
# Pallas kernel: the entire batch in a single step, channel-major throughout.
# ----------------------------------------------------------------------------
def _dense_decoder_kernel(x_ref, a_ref, w_ref, b_ref, o_ref, patch_ref, *,
                          nb, cin, cin_pad, hw):
    # x_ref     : (nb*Cin, Hin*Win)   channel-major input, whole batch
    # a_ref     : (Hin*Win, 9*HW)     upsample + zero-pad + 3x3-shift operator (precomputed)
    # w_ref     : (Cout, 9*Cin_pad)   conv weight, column index = t*Cin_pad + ci (zero padded)
    # b_ref     : (Cout, 1)           conv bias (broadcast over lanes)
    # o_ref     : (nb, Cout, HW)      channel-major output (lane-dense stores)
    # patch_ref : (9*Cin_pad, nb*HW)  VMEM staging for the tap stack

    # Upsample + im2col for all nine taps and all batch elements in ONE matmul.
    pw = jnp.dot(x_ref[...], a_ref[...], preferred_element_type=jnp.float32)   # (nb*Cin, 9*HW)

    # Restack (nb, Cin, 9, HW) -> (9*Cin_pad, nb*HW).  Each tap is assembled in registers
    # (batch blocks side by side on lanes, zero rows up to Cin_pad) and written as one full
    # 8-sublane-aligned, lane-dense tile, so no two stores alias an (8,128) VMEM tile.
    pad_rows = cin_pad - cin
    for t in range(9):
        blocks = [pw[b * cin:(b + 1) * cin, t * hw:(t + 1) * hw] for b in range(nb)]
        tap = blocks[0] if nb == 1 else jnp.concatenate(blocks, axis=1)         # (Cin, nb*HW)
        if pad_rows:
            tap = jnp.concatenate(
                [tap, jnp.zeros((pad_rows, nb * hw), jnp.float32)], axis=0)     # (Cin_pad, nb*HW)
        patch_ref[t * cin_pad:(t + 1) * cin_pad, :] = tap

    # The whole 3x3 conv (padding already folded into A) as a single K = 9*Cin_pad matmul.
    out = jnp.dot(w_ref[...], patch_ref[...], preferred_element_type=jnp.float32)  # (Cout, nb*HW)
    out = out + b_ref[...]

    # nb lane-aligned slices (offsets are multiples of HW, itself a multiple of 128).
    for b in range(nb):
        o_ref[b] = out[:, b * hw:(b + 1) * hw]


# ----------------------------------------------------------------------------
# Wrapper (NCHW in / NCHW out, matching the PyTorch module).
# ----------------------------------------------------------------------------
def dense_decoder_forward(x_nchw, w_hwio, bias, out_size):
    N, Cin, Hin, Win = x_nchw.shape
    Cout = w_hwio.shape[3]
    Hout = Wout = int(out_size)
    HW = Hout * Wout
    Q = Hin * Win
    cin_pad = ((Cin + 7) // 8) * 8   # tap stride padded to a sublane-tile multiple

    # ---- trace-time constants (exact PyTorch align_corners=False upsample) ----
    k_mat = np.kron(_bilinear_matrix(Hout, Hin), _bilinear_matrix(Wout, Win))    # (HW, Q)
    a_op = jnp.asarray(_tap_operator(k_mat, Hout, Wout))                          # (Q, 9*HW)
    # TODO(synk): for much larger spatial sizes apply the row/col bilinear factors separably
    # (two small matmuls) and/or tile the 9*HW columns over an "arbitrary" grid axis and cast
    # A to bf16; the dense f32 A grows as Q*9*HW and overruns v7x's 64 MiB VMEM near 64x64.

    # Conv weight as (Cout, 9*Cin_pad), column index t*Cin_pad + ci with t = dy*3 + dx;
    # padded channel columns are zero so the padded patch rows contribute nothing.
    w_tc = jnp.transpose(w_hwio.astype(jnp.float32).reshape(9, Cin, Cout), (2, 0, 1))
    if cin_pad > Cin:
        w_tc = jnp.pad(w_tc, ((0, 0), (0, 0), (0, cin_pad - Cin)))
    w_mat = w_tc.reshape(Cout, 9 * cin_pad)
    b_col = bias.astype(jnp.float32).reshape(Cout, 1)

    # Channel-major view: free reshape of NCHW, no transposes through HBM.
    x_cm = x_nchw.astype(jnp.float32).reshape(N * Cin, Q)

    kernel = functools.partial(_dense_decoder_kernel, nb=N, cin=Cin, cin_pad=cin_pad, hw=HW)
    flops = int(2 * N * Cin * Q * 9 * HW + 2 * Cout * 9 * cin_pad * N * HW)
    bytes_accessed = int(4 * (x_cm.size + a_op.size + w_mat.size + b_col.size + N * Cout * HW))

    out_cm = pl.pallas_call(
        kernel,
        out_shape=jax.ShapeDtypeStruct((N, Cout, HW), jnp.float32),
        grid_spec=pltpu.PrefetchScalarGridSpec(
            num_scalar_prefetch=0,
            # Whole batch in one grid step: at ~4 MFLOP the per-step pipeline fixed cost and
            # duplicated A/W DMA of a grid=(N,) split (even across v7x's two TensorCores)
            # outweigh any compute overlap.
            # TODO(synk): for much larger Cout*HW re-introduce a grid=(N,) "parallel" axis so
            # dual-TensorCore parts split the batch.
            grid=(1,),
            in_specs=[
                pl.BlockSpec((N * Cin, Q), lambda g: (0, 0)),
                pl.BlockSpec((Q, 9 * HW), lambda g: (0, 0)),
                pl.BlockSpec((Cout, 9 * cin_pad), lambda g: (0, 0)),
                pl.BlockSpec((Cout, 1), lambda g: (0, 0)),
            ],
            # HW = 256 keeps the output lane dim a multiple of 128 (unmasked full-lane stores).
            # If spatial_size ever makes HW % 128 != 0, pad A's per-tap columns and the output
            # lane dim to a 128 multiple and crop in the wrapper.
            out_specs=pl.BlockSpec((N, Cout, HW), lambda g: (0, 0, 0)),
            scratch_shapes=[pltpu.VMEM((9 * cin_pad, N * HW), jnp.float32)],
        ),
        compiler_params=pltpu.CompilerParams(dimension_semantics=("arbitrary",)),
        cost_estimate=pl.CostEstimate(flops=flops, transcendentals=0,
                                      bytes_accessed=bytes_accessed),
    )(x_cm, a_op, w_mat, b_col)

    # (N, Cout, HW) is already NCHW up to a free reshape.
    return out_cm.reshape(N, Cout, Hout, Wout)


if __name__ == "__main__":
    # DenseDecoderLayer(scale=0, spatial_size=16, in_size=4): Cout = 64 * min(2**0, 16) = 64.
    scale = 0
    spatial_size = 16
    in_size = 4
    out_channels = 64 * min(2 ** scale, 16)

    N, Hin, Win = 2, 4, 4

    key = jax.random.PRNGKey(0)
    kx, kw, kb = jax.random.split(key, 3)

    # Deterministic parameter init (PyTorch Conv2d default bounds; not a checkpoint).
    fan_in = in_size * 3 * 3
    bound = 1.0 / np.sqrt(fan_in)
    w_hwio = jax.random.uniform(kw, (3, 3, in_size, out_channels), jnp.float32, -bound, bound)
    bias = jax.random.uniform(kb, (out_channels,), jnp.float32, -bound, bound)

    x = jax.random.normal(kx, (N, in_size, Hin, Win), jnp.float32)   # NCHW, like PyTorch

    out = dense_decoder_forward(x, w_hwio, bias, spatial_size)
    out = jax.block_until_ready(out)
    assert out.shape == (N, out_channels, spatial_size, spatial_size), out.shape

    # Pure-JAX reference: same exact bilinear operator + SAME-padded 3x3 conv.
    k_ref = jnp.asarray(np.kron(_bilinear_matrix(spatial_size, Hin),
                                _bilinear_matrix(spatial_size, Win)), jnp.float32)
    x_nhwc = jnp.transpose(x, (0, 2, 3, 1))
    up_ref = jnp.einsum("pq,nqc->npc", k_ref, x_nhwc.reshape(N, Hin * Win, in_size))
    up_ref = up_ref.reshape(N, spatial_size, spatial_size, in_size)
    conv_ref = jax.lax.conv_general_dilated(
        up_ref, w_hwio, window_strides=(1, 1), padding="SAME",
        dimension_numbers=("NHWC", "HWIO", "NHWC")) + bias
    ref = jnp.transpose(conv_ref, (0, 3, 1, 2))

    max_err = float(jnp.max(jnp.abs(out - ref)))
    assert max_err < 1e-3, f"max abs error {max_err}"

    print("KERNEL_OK")
</pallas_src>

<mosaic_0001>
module attributes {stable_mosaic.version = 11 : i64} {
  func.func @_dense_decoder_kernel(%arg0: i32, %arg1: memref<8x16xf32, #tpu.memory_space<vmem>>, %arg2: memref<16x2304xf32, #tpu.memory_space<vmem>>, %arg3: memref<64x72xf32, #tpu.memory_space<vmem>>, %arg4: memref<64x1xf32, #tpu.memory_space<vmem>>, %arg5: memref<2x64x256xf32, #tpu.memory_space<vmem>>, %arg6: memref<72x512xf32, #tpu.memory_space<vmem>>) attributes {dimension_semantics = [#tpu.dimension_semantics<arbitrary>], iteration_bounds = array<i64: 1>, scalar_prefetch = 0 : i64, scratch_operands = 1 : i64, tpu.core_type = #tpu.core_type<tc>, window_params = [{pipeline_mode = #tpu.pipeline_mode<synchronous>, transform_indices = @transform_0, window_bounds = array<i64: 8, 16>}, {pipeline_mode = #tpu.pipeline_mode<synchronous>, transform_indices = @transform_1, window_bounds = array<i64: 16, 2304>}, {pipeline_mode = #tpu.pipeline_mode<synchronous>, transform_indices = @transform_2, window_bounds = array<i64: 64, 72>}, {pipeline_mode = #tpu.pipeline_mode<synchronous>, transform_indices = @transform_3, window_bounds = array<i64: 64, 1>}, {pipeline_mode = #tpu.pipeline_mode<synchronous>, transform_indices = @transform_4, window_bounds = array<i64: 2, 64, 256>}]} {
    %c0 = arith.constant 0 : index
    %c0_0 = arith.constant 0 : index
    %0 = vector.load %arg1[%c0, %c0_0] : memref<8x16xf32, #tpu.memory_space<vmem>>, vector<8x16xf32>
    %c0_1 = arith.constant 0 : index
    %c0_2 = arith.constant 0 : index
    %1 = vector.load %arg2[%c0_1, %c0_2] : memref<16x2304xf32, #tpu.memory_space<vmem>>, vector<16x2304xf32>
    %cst = arith.constant dense<0.000000e+00> : vector<8x2304xf32>
    %2 = tpu.matmul %0, %1, %cst {dimension_numbers = #tpu.dot_dimension_numbers<[1], [0], [0], [1], [0, 0, 1, 1], [], []>} : vector<8x16xf32>, vector<16x2304xf32>, vector<8x2304xf32> -> vector<8x2304xf32>
    %3 = vector.extract_strided_slice %2 {offsets = [0, 0], sizes = [4, 256], strides = [1, 1]} : vector<8x2304xf32> to vector<4x256xf32>
    %4 = vector.extract_strided_slice %2 {offsets = [4, 0], sizes = [4, 256], strides = [1, 1]} : vector<8x2304xf32> to vector<4x256xf32>
    %5 = tpu.concatenate %3, %4 in 1 : vector<4x256xf32>, vector<4x256xf32> -> vector<4x512xf32>
    %cst_3 = arith.constant 0.000000e+00 : f32
    %6 = vector.broadcast %cst_3 : f32 to vector<4x512xf32>
    %7 = tpu.concatenate %5, %6 in 0 : vector<4x512xf32>, vector<4x512xf32> -> vector<8x512xf32>
    %c0_4 = arith.constant 0 : index
    %c0_5 = arith.constant 0 : index
    %8 = vector.load %arg6[%c0_4, %c0_5] : memref<72x512xf32, #tpu.memory_space<vmem>>, vector<8x512xf32>
    tpu.vector_store %arg6[%c0_4, %c0_5], %7 {strides = array<i32>} : memref<72x512xf32, #tpu.memory_space<vmem>>, vector<8x512xf32>,
    %9 = vector.extract_strided_slice %2 {offsets = [0, 256], sizes = [4, 256], strides = [1, 1]} : vector<8x2304xf32> to vector<4x256xf32>
    %10 = vector.extract_strided_slice %2 {offsets = [4, 256], sizes = [4, 256], strides = [1, 1]} : vector<8x2304xf32> to vector<4x256xf32>
    %11 = tpu.concatenate %9, %10 in 1 : vector<4x256xf32>, vector<4x256xf32> -> vector<4x512xf32>
    %cst_6 = arith.constant 0.000000e+00 : f32
    %12 = vector.broadcast %cst_6 : f32 to vector<4x512xf32>
    %13 = tpu.concatenate %11, %12 in 0 : vector<4x512xf32>, vector<4x512xf32> -> vector<8x512xf32>
    %c8 = arith.constant 8 : index
    %c0_7 = arith.constant 0 : index
    %14 = vector.load %arg6[%c8, %c0_7] : memref<72x512xf32, #tpu.memory_space<vmem>>, vector<8x512xf32>
    tpu.vector_store %arg6[%c8, %c0_7], %13 {strides = array<i32>} : memref<72x512xf32, #tpu.memory_space<vmem>>, vector<8x512xf32>,
    %15 = vector.extract_strided_slice %2 {offsets = [0, 512], sizes = [4, 256], strides = [1, 1]} : vector<8x2304xf32> to vector<4x256xf32>
    %16 = vector.extract_strided_slice %2 {offsets = [4, 512], sizes = [4, 256], strides = [1, 1]} : vector<8x2304xf32> to vector<4x256xf32>
    %17 = tpu.concatenate %15, %16 in 1 : vector<4x256xf32>, vector<4x256xf32> -> vector<4x512xf32>
    %cst_8 = arith.constant 0.000000e+00 : f32
    %18 = vector.broadcast %cst_8 : f32 to vector<4x512xf32>
    %19 = tpu.concatenate %17, %18 in 0 : vector<4x512xf32>, vector<4x512xf32> -> vector<8x512xf32>
    %c16 = arith.constant 16 : index
    %c0_9 = arith.constant 0 : index
    %20 = vector.load %arg6[%c16, %c0_9] : memref<72x512xf32, #tpu.memory_space<vmem>>, vector<8x512xf32>
    tpu.vector_store %arg6[%c16, %c0_9], %19 {strides = array<i32>} : memref<72x512xf32, #tpu.memory_space<vmem>>, vector<8x512xf32>,
    %21 = vector.extract_strided_slice %2 {offsets = [0, 768], sizes = [4, 256], strides = [1, 1]} : vector<8x2304xf32> to vector<4x256xf32>
    %22 = vector.extract_strided_slice %2 {offsets = [4, 768], sizes = [4, 256], strides = [1, 1]} : vector<8x2304xf32> to vector<4x256xf32>
    %23 = tpu.concatenate %21, %22 in 1 : vector<4x256xf32>, vector<4x256xf32> -> vector<4x512xf32>
    %cst_10 = arith.constant 0.000000e+00 : f32
    %24 = vector.broadcast %cst_10 : f32 to vector<4x512xf32>
    %25 = tpu.concatenate %23, %24 in 0 : vector<4x512xf32>, vector<4x512xf32> -> vector<8x512xf32>
    %c24 = arith.constant 24 : index
    %c0_11 = arith.constant 0 : index
    %26 = vector.load %arg6[%c24, %c0_11] : memref<72x512xf32, #tpu.memory_space<vmem>>, vector<8x512xf32>
    tpu.vector_store %arg6[%c24, %c0_11], %25 {strides = array<i32>} : memref<72x512xf32, #tpu.memory_space<vmem>>, vector<8x512xf32>,
    %27 = vector.extract_strided_slice %2 {offsets = [0, 1024], sizes = [4, 256], strides = [1, 1]} : vector<8x2304xf32> to vector<4x256xf32>
    %28 = vector.extract_strided_slice %2 {offsets = [4, 1024], sizes = [4, 256], strides = [1, 1]} : vector<8x2304xf32> to vector<4x256xf32>
    %29 = tpu.concatenate %27, %28 in 1 : vector<4x256xf32>, vector<4x256xf32> -> vector<4x512xf32>
    %cst_12 = arith.constant 0.000000e+00 : f32
    %30 = vector.broadcast %cst_12 : f32 to vector<4x512xf32>
    %31 = tpu.concatenate %29, %30 in 0 : vector<4x512xf32>, vector<4x512xf32> -> vector<8x512xf32>
    %c32 = arith.constant 32 : index
    %c0_13 = arith.constant 0 : index
    %32 = vector.load %arg6[%c32, %c0_13] : memref<72x512xf32, #tpu.memory_space<vmem>>, vector<8x512xf32>
    tpu.vector_store %arg6[%c32, %c0_13], %31 {strides = array<i32>} : memref<72x512xf32, #tpu.memory_space<vmem>>, vector<8x512xf32>,
    %33 = vector.extract_strided_slice %2 {offsets = [0, 1280], sizes = [4, 256], strides = [1, 1]} : vector<8x2304xf32> to vector<4x256xf32>
    %34 = vector.extract_strided_slice %2 {offsets = [4, 1280], sizes = [4, 256], strides = [1, 1]} : vector<8x2304xf32> to vector<4x256xf32>
    %35 = tpu.concatenate %33, %34 in 1 : vector<4x256xf32>, vector<4x256xf32> -> vector<4x512xf32>
    %cst_14 = arith.constant 0.000000e+00 : f32
    %36 = vector.broadcast %cst_14 : f32 to vector<4x512xf32>
    %37 = tpu.concatenate %35, %36 in 0 : vector<4x512xf32>, vector<4x512xf32> -> vector<8x512xf32>
    %c40 = arith.constant 40 : index
    %c0_15 = arith.constant 0 : index
    %38 = vector.load %arg6[%c40, %c0_15] : memref<72x512xf32, #tpu.memory_space<vmem>>, vector<8x512xf32>
    tpu.vector_store %arg6[%c40, %c0_15], %37 {strides = array<i32>} : memref<72x512xf32, #tpu.memory_space<vmem>>, vector<8x512xf32>,
    %39 = vector.extract_strided_slice %2 {offsets = [0, 1536], sizes = [4, 256], strides = [1, 1]} : vector<8x2304xf32> to vector<4x256xf32>
    %40 = vector.extract_strided_slice %2 {offsets = [4, 1536], sizes = [4, 256], strides = [1, 1]} : vector<8x2304xf32> to vector<4x256xf32>
    %41 = tpu.concatenate %39, %40 in 1 : vector<4x256xf32>, vector<4x256xf32> -> vector<4x512xf32>
    %cst_16 = arith.constant 0.000000e+00 : f32
    %42 = vector.broadcast %cst_16 : f32 to vector<4x512xf32>
    %43 = tpu.concatenate %41, %42 in 0 : vector<4x512xf32>, vector<4x512xf32> -> vector<8x512xf32>
    %c48 = arith.constant 48 : index
    %c0_17 = arith.constant 0 : index
    %44 = vector.load %arg6[%c48, %c0_17] : memref<72x512xf32, #tpu.memory_space<vmem>>, vector<8x512xf32>
    tpu.vector_store %arg6[%c48, %c0_17], %43 {strides = array<i32>} : memref<72x512xf32, #tpu.memory_space<vmem>>, vector<8x512xf32>,
    %45 = vector.extract_strided_slice %2 {offsets = [0, 1792], sizes = [4, 256], strides = [1, 1]} : vector<8x2304xf32> to vector<4x256xf32>
    %46 = vector.extract_strided_slice %2 {offsets = [4, 1792], sizes = [4, 256], strides = [1, 1]} : vector<8x2304xf32> to vector<4x256xf32>
    %47 = tpu.concatenate %45, %46 in 1 : vector<4x256xf32>, vector<4x256xf32> -> vector<4x512xf32>
    %cst_18 = arith.constant 0.000000e+00 : f32
    %48 = vector.broadcast %cst_18 : f32 to vector<4x512xf32>
    %49 = tpu.concatenate %47, %48 in 0 : vector<4x512xf32>, vector<4x512xf32> -> vector<8x512xf32>
    %c56 = arith.constant 56 : index
    %c0_19 = arith.constant 0 : index
    %50 = vector.load %arg6[%c56, %c0_19] : memref<72x512xf32, #tpu.memory_space<vmem>>, vector<8x512xf32>
    tpu.vector_store %arg6[%c56, %c0_19], %49 {strides = array<i32>} : memref<72x512xf32, #tpu.memory_space<vmem>>, vector<8x512xf32>,
    %51 = vector.extract_strided_slice %2 {offsets = [0, 2048], sizes = [4, 256], strides = [1, 1]} : vector<8x2304xf32> to vector<4x256xf32>
    %52 = vector.extract_strided_slice %2 {offsets = [4, 2048], sizes = [4, 256], strides = [1, 1]} : vector<8x2304xf32> to vector<4x256xf32>
    %53 = tpu.concatenate %51, %52 in 1 : vector<4x256xf32>, vector<4x256xf32> -> vector<4x512xf32>
    %cst_20 = arith.constant 0.000000e+00 : f32
    %54 = vector.broadcast %cst_20 : f32 to vector<4x512xf32>
    %55 = tpu.concatenate %53, %54 in 0 : vector<4x512xf32>, vector<4x512xf32> -> vector<8x512xf32>
    %c64 = arith.constant 64 : index
    %c0_21 = arith.constant 0 : index
    %56 = vector.load %arg6[%c64, %c0_21] : memref<72x512xf32, #tpu.memory_space<vmem>>, vector<8x512xf32>
    tpu.vector_store %arg6[%c64, %c0_21], %55 {strides = array<i32>} : memref<72x512xf32, #tpu.memory_space<vmem>>, vector<8x512xf32>,
    %c0_22 = arith.constant 0 : index
    %c0_23 = arith.constant 0 : index
    %57 = vector.load %arg3[%c0_22, %c0_23] : memref<64x72xf32, #tpu.memory_space<vmem>>, vector<64x72xf32>
    %c0_24 = arith.constant 0 : index
    %c0_25 = arith.constant 0 : index
    %58 = vector.load %arg6[%c0_24, %c0_25] : memref<72x512xf32, #tpu.memory_space<vmem>>, vector<72x512xf32>
    %cst_26 = arith.constant dense<0.000000e+00> : vector<64x512xf32>
    %59 = tpu.matmul %57, %58, %cst_26 {dimension_numbers = #tpu.dot_dimension_numbers<[1], [0], [0], [1], [0, 0, 1, 1], [], []>} : vector<64x72xf32>, vector<72x512xf32>, vector<64x512xf32> -> vector<64x512xf32>
    %c0_27 = arith.constant 0 : index
    %c0_28 = arith.constant 0 : index
    %60 = vector.load %arg4[%c0_27, %c0_28] : memref<64x1xf32, #tpu.memory_space<vmem>>, vector<64x1xf32>
    %61 = vector.broadcast %60 : vector<64x1xf32> to vector<64x512xf32>
    %62 = arith.addf %59, %61 : vector<64x512xf32>
    %63 = vector.extract_strided_slice %62 {offsets = [0, 0], sizes = [64, 256], strides = [1, 1]} : vector<64x512xf32> to vector<64x256xf32>
    %c0_29 = arith.constant 0 : index
    %c0_30 = arith.constant 0 : index
    %c0_31 = arith.constant 0 : index
    %64 = vector.load %arg5[%c0_29, %c0_30, %c0_31] : memref<2x64x256xf32, #tpu.memory_space<vmem>>, vector<1x64x256xf32>
    %65 = vector.shape_cast %64 : vector<1x64x256xf32> to vector<64x256xf32>
    %66 = vector.shape_cast %63 : vector<64x256xf32> to vector<1x64x256xf32>
    tpu.vector_store %arg5[%c0_29, %c0_30, %c0_31], %66 {strides = array<i32>} : memref<2x64x256xf32, #tpu.memory_space<vmem>>, vector<1x64x256xf32>,
    %67 = vector.extract_strided_slice %62 {offsets = [0, 256], sizes = [64, 256], strides = [1, 1]} : vector<64x512xf32> to vector<64x256xf32>
    %c1 = arith.constant 1 : index
    %c0_32 = arith.constant 0 : index
    %c0_33 = arith.constant 0 : index
    %68 = vector.load %arg5[%c1, %c0_32, %c0_33] : memref<2x64x256xf32, #tpu.memory_space<vmem>>, vector<1x64x256xf32>
    %69 = vector.shape_cast %68 : vector<1x64x256xf32> to vector<64x256xf32>
    %70 = vector.shape_cast %67 : vector<64x256xf32> to vector<1x64x256xf32>
    tpu.vector_store %arg5[%c1, %c0_32, %c0_33], %70 {strides = array<i32>} : memref<2x64x256xf32, #tpu.memory_space<vmem>>, vector<1x64x256xf32>,
    return
  }
  func.func @transform_0(%arg0: i32) -> (i32, i32) {
    %c0_i32 = arith.constant 0 : i32
    %c0_i32_0 = arith.constant 0 : i32
    %c0_i32_1 = arith.constant 0 : i32
    return %c0_i32, %c0_i32_0 : i32, i32
  }
  func.func @transform_1(%arg0: i32) -> (i32, i32) {
    %c0_i32 = arith.constant 0 : i32
    %c0_i32_0 = arith.constant 0 : i32
    %c0_i32_1 = arith.constant 0 : i32
    return %c0_i32, %c0_i32_0 : i32, i32
  }
  func.func @transform_2(%arg0: i32) -> (i32, i32) {
    %c0_i32 = arith.constant 0 : i32
    %c0_i32_0 = arith.constant 0 : i32
    %c0_i32_1 = arith.constant 0 : i32
    return %c0_i32, %c0_i32_0 : i32, i32
  }
  func.func @transform_3(%arg0: i32) -> (i32, i32) {
    %c0_i32 = arith.constant 0 : i32
    %c0_i32_0 = arith.constant 0 : i32
    %c0_i32_1 = arith.constant 0 : i32
    return %c0_i32, %c0_i32_0 : i32, i32
  }
  func.func @transform_4(%arg0: i32) -> (i32, i32, i32) {
    %c0_i32 = arith.constant 0 : i32
    %c0_i32_0 = arith.constant 0 : i32
    %c0_i32_1 = arith.constant 0 : i32
    %c0_i32_2 = arith.constant 0 : i32
    return %c0_i32, %c0_i32_0, %c0_i32_1 : i32, i32, i32
  }
}

</mosaic_0001>

<bundles_post_ra>
// kernel: tpu_custom_call.1
= control target key start
LH: loop header
LB: loop body
LE: loop exit
PB: predicated region body
PF: predicated region fallthrough
CT: control target
= control target key end

     0   :  { %9 = vsyncpa [#allocation4], 0  ;;  %s1591_s0 = inlined_call_operand.hbm [shape: f32[8,16], index: 0, kind: input, shape index: {}]   ;;  %s1592_s1 = inlined_call_operand.hbm [shape: f32[16,2304], index: 1, kind: input, shape index: {}]   ;;  %s1593_s2 = inlined_call_operand.vmem [shape: f32[64,72], index: 2, kind: input, shape index: {}]   ;;  %s1594_s3 = inlined_call_operand.vmem [shape: f32[64,1], index: 3, kind: input, shape index: {}]   ;;  %s1595_s4 = inlined_call_operand.hbm [shape: f32[2,64,256], index: 4, kind: output, shape index: {}]  }
   0x1   :  { %10 = vsyncpa [#allocation7], 0 }
   0x2   :  { %11 = vsyncpa [#allocation5], 0  ;;  %s1383_s15 = smov [#allocation3]   ;;  %s1384_s17 = smov [#allocation6]  }
   0x3   :  { %s18_s16 = sshll.u32 %s1383_s15, 4  ;;  %s27_s18 = sshll.u32 %s1384_s17, 4  ;;  %s19_s16 = int_to_ptr.vmem [resolvable:$true] %s18_s16  ;;  %s28_s18 = int_to_ptr.vmem [resolvable:$true] %s27_s18 }
   0x4   :  { %s1325_s19 = scalar_lea.vmem %s19_s16, 128  ;;  %p1330_p1 = scmp.lt.s32.totalorder %s19_s16, %s19_s16 }
   0x5   :  { %p1326_p0 = scmp.ne.s32.totalorder %s19_s16, %s1325_s19  ;;  %p1331_p2 = scmp.lt.s32.totalorder %s1325_s19, %s1325_s19 }
   0x7   :  { %p1332_p3 = por %p1331_p2, %p1330_p1 }
   0x9   :  { %p1333_p4 = pnand %p1332_p3, %p1326_p0 }
   0xb   :  { %1336 = shalt.err (!%p1333_p4)
}
   0xc   :  { %21 = dma.hbm_to_vmem [thread:$0]  %s1591_s0, 128, %s19_s16, [#allocation4]  }
   0xd   :  { %s1345_s22 = scalar_lea.vmem %s28_s18, 4608  ;;  %p1350_p6 = scmp.lt.s32.totalorder %s28_s18, %s28_s18 }
   0xe   :  { %p1346_p5 = scmp.ne.s32.totalorder %s28_s18, %s1345_s22  ;;  %p1351_p7 = scmp.lt.s32.totalorder %s1345_s22, %s1345_s22 }
  0x10   :  { %p1352_p8 = por %p1351_p7, %p1350_p6 }
  0x12   :  { %p1353_p9 = pnand %p1352_p8, %p1346_p5 }
  0x14   :  { %1356 = shalt.err (!%p1353_p9)
}
  0x15   :  { %s1385_s23 = smov 2304   ;;  %s1386_s24 = smov 144  }
  0x16   :  { %33 = dma.hbm_to_vmem [thread:$0]  %s1592_s1, 4608, %s28_s18, [#allocation7], %s1385_s23, %s1385_s23, %s1386_s24  }
  0x17   :  { %1377 = dma.done.wait [#allocation4], 128  }
  0x18   :  { %1378 = vsyncadd [#allocation4], 4294967168 }
  0x19   :  { %1379 = dma.done.wait [#allocation7], 4608  }
  0x1a   :  { %1380 = vsyncadd [#allocation7], 4294962688  ;;  %v1387_v0 = vmov 0.0   ;;  %v64_v1 = vld [vmem:[#allocation6 + $0x98] sm:$0xff]  ;;  %v63_v2 = vld [vmem:[#allocation6 + $0x90] sm:$0xff]  ;;  %vm81_vm0 = vcmask 130048  }
  0x1b   :  { %149 = vmatprep.mubr.f32.mxu0 %v1387_v0  ;;  %220 = vmatprep.mubr.f32.mxu1 %v1387_v0  ;;  %v46_v3 = vld [vmem:[#allocation6 + $0x8] sm:$0xff]  ;;  %v45_v4 = vld [vmem:[#allocation6] sm:$0xff]  ;;  %v1425_v5 = vld [vmem:[#allocation3] sm:$0xff]  ;;  %v1388_v40 = vmov 0   ;;  %vm730_vm1 = vcmask 1043456   ;;  %vm943_vm2 = vcmask 588800  }
  0x1c   :  { %113 = vmatprep.subr.mxu0 %v64_v1  ;;  %v68_v6 = vld [vmem:[#allocation6 + $0xb8] sm:$0xff]  ;;  %v66_v7 = vld [vmem:[#allocation6 + $0xa8] sm:$0xff]  ;;  %v65_v8 = vld [vmem:[#allocation6 + $0xa0] sm:$0xff]  ;;  %1315 = vset.pattern.permute.xlu0 %v1388_v40 }
  0x1d   :  { %114 = vmatpush1.msra.mxu0 %v63_v2  ;;  %184 = vmatprep.subr.mxu1 %v66_v7  ;;  %v67_v9 = vld [vmem:[#allocation6 + $0xb0] sm:$0xff]  ;;  %v48_v10 = vld [vmem:[#allocation6 + $0x18] sm:$0xff]  ;;  %v50_v11 = vld [vmem:[#allocation6 + $0x28] sm:$0xff] }
  0x1e   :  { %115 = vmatprep.subr.mxu0 %v46_v3  ;;  %185 = vmatpush1.msra.mxu1 %v65_v8  ;;  %v49_v12 = vld [vmem:[#allocation6 + $0x20] sm:$0xff]  ;;  %v47_v13 = vld [vmem:[#allocation6 + $0x10] sm:$0xff]  ;;  %v72_v14 = vld [vmem:[#allocation6 + $0xd8] sm:$0xff] }
  0x1f   :  { %116 = vmatpush1.msra.mxu0 %v45_v4  ;;  %186 = vmatprep.subr.mxu1 %v48_v10  ;;  %v70_v15 = vld [vmem:[#allocation6 + $0xc8] sm:$0xff]  ;;  %v71_v16 = vld [vmem:[#allocation6 + $0xd0] sm:$0xff]  ;;  %v69_v17 = vld [vmem:[#allocation6 + $0xc0] sm:$0xff] }
  0x20   :  { %1245 = vmatmul.mubr.msk.f32.vlgmr.msra.gmra.mxu0 %vm81_vm0, %v1425_v5  ;;  %255 = vmatprep.subr.mxu0 %v68_v6  ;;  %v54_v18 = vld [vmem:[#allocation6 + $0x48] sm:$0xff]  ;;  %v52_v19 = vld [vmem:[#allocation6 + $0x38] sm:$0xff]  ;;  %v53_v20 = vld [vmem:[#allocation6 + $0x40] sm:$0xff] }
  0x21   :  { %256 = vmatpush1.msra.mxu0 %v67_v9  ;;  %291 = vmatprep.mubr.f32.mxu0 %v1387_v0  ;;  %v51_v21 = vld [vmem:[#allocation6 + $0x30] sm:$0xff]  ;;  %v76_v22 = vld [vmem:[#allocation6 + $0xf8] sm:$0xff]  ;;  %v74_v23 = vld [vmem:[#allocation6 + $0xe8] sm:$0xff] }
  0x22   :  { %257 = vmatprep.subr.mxu0 %v50_v11  ;;  %187 = vmatpush1.msra.mxu1 %v47_v13  ;;  %v75_v24 = vld [vmem:[#allocation6 + $0xf0] sm:$0xff]  ;;  %v73_v25 = vld [vmem:[#allocation6 + $0xe0] sm:$0xff]  ;;  %v58_v26 = vld [vmem:[#allocation6 + $0x68] sm:$0xff] }
  0x23   :  { %258 = vmatpush1.msra.mxu0 %v49_v12  ;;  %1246 = vmatmul.mubr.msk.f32.vlgmr.msra.gmra.mxu1 %vm81_vm0, %v1425_v5  ;;  %v56_v27 = vld [vmem:[#allocation6 + $0x58] sm:$0xff]  ;;  %v57_v28 = vld [vmem:[#allocation6 + $0x60] sm:$0xff]  ;;  %v55_v29 = vld [vmem:[#allocation6 + $0x50] sm:$0xff] }
  0x24   :  { %1247 = vmatmul.mubr.msk.f32.vlgmr.msra.gmra.mxu0 %vm81_vm0, %v1425_v5  ;;  %397 = vmatprep.subr.mxu0 %v72_v14  ;;  %v80_v30 = vld [vmem:[#allocation6 + $0x118] sm:$0xff]  ;;  %v78_v31 = vld [vmem:[#allocation6 + $0x108] sm:$0xff]  ;;  %v79_v32 = vld [vmem:[#allocation6 + $0x110] sm:$0xff] }
  0x25   :  { %326 = vmatprep.subr.mxu1 %v70_v15  ;;  %398 = vmatpush1.msra.mxu0 %v71_v16  ;;  %v77_v33 = vld [vmem:[#allocation6 + $0x100] sm:$0xff]  ;;  %v62_v34 = vld [vmem:[#allocation6 + $0x88] sm:$0xff]  ;;  %v60_v35 = vld [vmem:[#allocation6 + $0x78] sm:$0xff] }
  0x26   :  { %327 = vmatpush1.msra.mxu1 %v69_v17  ;;  %399 = vmatprep.subr.mxu0 %v54_v18  ;;  %v61_v36 = vld [vmem:[#allocation6 + $0x80] sm:$0xff]  ;;  %v59_v37 = vld [vmem:[#allocation6 + $0x70] sm:$0xff]  ;;  %v895_v38 = vld [vmem:[%s1594_s3] sm:$0xff] }
  0x27   :  { %328 = vmatprep.subr.mxu1 %v52_v19  ;;  %400 = vmatpush1.msra.mxu0 %v53_v20  ;;  %v897_v39 = vld [vmem:[%s1594_s3 + $0x10] sm:$0xff]  ;;  %v896_v41 = vld [vmem:[%s1594_s3 + $0x8] sm:$0xff]  ;;  %v898_v42 = vld [vmem:[%s1594_s3 + $0x18] sm:$0xff] }
  0x28   :  { %433 = vmatprep.mubr.f32.mxu0 %v1387_v0  ;;  %329 = vmatpush1.msra.mxu1 %v51_v21  ;;  %v900_v43 = vld [vmem:[%s1594_s3 + $0x28] sm:$0xff]  ;;  %v899_v44 = vld [vmem:[%s1594_s3 + $0x20] sm:$0xff]  ;;  %v902_v45 = vld [vmem:[%s1594_s3 + $0x38] sm:$0xff] }
  0x29   :  { %362 = vmatprep.mubr.f32.mxu1 %v1387_v0  ;;  %1249 = vmatmul.mubr.msk.f32.vlgmr.msra.gmra.mxu0 %vm81_vm0, %v1425_v5  ;;  %v901_v46 = vld [vmem:[%s1594_s3 + $0x30] sm:$0xff]  ;;  %v851_v18 = vld [vmem:[%s1593_s2] sm:$0xff]  ;;  %v852_v21 = vld [vmem:[%s1593_s2 + $0x8] sm:$0xff] }
  0x2a   :  { %539 = vmatprep.subr.mxu0 %v76_v22  ;;  %1248 = vmatmul.mubr.msk.f32.vlgmr.msra.gmra.mxu1 %vm81_vm0, %v1425_v5  ;;  %v853_v22 = vld [vmem:[%s1593_s2 + $0x10] sm:$0xff] }
  0x2b   :  { %468 = vmatprep.subr.mxu1 %v74_v23  ;;  %540 = vmatpush1.msra.mxu0 %v75_v24  ;;  %v854_v23 = vld [vmem:[%s1593_s2 + $0x18] sm:$0xff]  ;;  %v855_v24 = vld [vmem:[%s1593_s2 + $0x20] sm:$0xff] }
  0x2c   :  { %469 = vmatpush1.msra.mxu1 %v73_v25  ;;  %541 = vmatprep.subr.mxu0 %v58_v26  ;;  %v856_v25 = vld [vmem:[%s1593_s2 + $0x28] sm:$0xff]  ;;  %v857_v26 = vld [vmem:[%s1593_s2 + $0x30] sm:$0xff] }
  0x2d   :  { %470 = vmatprep.subr.mxu1 %v56_v27  ;;  %542 = vmatpush1.msra.mxu0 %v57_v28  ;;  %v858_v27 = vld [vmem:[%s1593_s2 + $0x38] sm:$0xff]  ;;  %s1389_s2 = smov [#allocation8]  }
  0x2e   :  { %575 = vmatprep.mubr.f32.mxu0 %v1387_v0  ;;  %471 = vmatpush1.msra.mxu1 %v55_v29  ;;  %s1232_s28 = sshll.u32 %s1389_s2, 4  ;;  %s1233_s28 = int_to_ptr.vmem [resolvable:$true] %s1232_s28 }
  0x2f   :  { %504 = vmatprep.mubr.f32.mxu1 %v1387_v0  ;;  %1251 = vmatmul.mubr.msk.f32.vlgmr.msra.gmra.mxu0 %vm81_vm0, %v1425_v5  ;;  %s1357_s29 = scalar_lea.vmem %s1233_s28, 4096  ;;  %p1362_p11 = scmp.lt.s32.totalorder %s1233_s28, %s1233_s28 }
  0x30   :  { %681 = vmatprep.subr.mxu0 %v80_v30  ;;  %1250 = vmatmul.mubr.msk.f32.vlgmr.msra.gmra.mxu1 %vm81_vm0, %v1425_v5  ;;  %p1358_p10 = scmp.ne.s32.totalorder %s1233_s28, %s1357_s29  ;;  %p1363_p12 = scmp.lt.s32.totalorder %s1357_s29, %s1357_s29 }
  0x31   :  { %610 = vmatprep.subr.mxu1 %v78_v31  ;;  %682 = vmatpush1.msra.mxu0 %v79_v32 }
  0x32   :  { %611 = vmatpush1.msra.mxu1 %v77_v33  ;;  %683 = vmatprep.subr.mxu0 %v62_v34  ;;  %p1364_p13 = por %p1363_p12, %p1362_p11 }
  0x33   :  { %612 = vmatprep.subr.mxu1 %v60_v35  ;;  %684 = vmatpush1.msra.mxu0 %v61_v36 }
  0x34   :  { %717 = vmatprep.mubr.f32.mxu0 %v1387_v0  ;;  %613 = vmatpush1.msra.mxu1 %v59_v37  ;;  %p1365_p0 = pnand %p1364_p13, %p1358_p10 }
  0x35   :  { %646 = vmatprep.mubr.f32.mxu1 %v1387_v0  ;;  %1253 = vmatmul.mubr.msk.f32.vlgmr.msra.gmra.mxu0 %vm81_vm0, %v1425_v5 }
  0x36   :  { %1252 = vmatmul.mubr.msk.f32.vlgmr.msra.gmra.mxu1 %vm81_vm0, %v1425_v5  ;;  %1145 = vmatprep.mubr.f32.mxu0 %v1387_v0 }
  0x37   :  { %1032 = vmatprep.mubr.f32.mxu1 %v1387_v0  ;;  %1316 = vset.pattern.permute.xlu1 %v1388_v40 }
  0x38   :  { %905 = vperm.xlu0 %1315, %v895_v38   ;;  %915 = vperm.xlu1 %1316, %v897_v39  }
  0x3c   :  { %910 = vperm.xlu0 %1315, %v896_v41   ;;  %920 = vperm.xlu1 %1316, %v898_v42  }
  0x40   :  { %930 = vperm.xlu1 %1316, %v900_v43   ;;  %925 = vperm.xlu0 %1315, %v899_v44  }
  0x44   :  { %940 = vperm.xlu1 %1316, %v902_v45   ;;  %935 = vperm.xlu0 %1315, %v901_v46  }
  0xb3   :  { %v906_v28 = vpop.permute.xlu0 %905 }
  0xb7   :  { %v911_v31 = vpop.permute.xlu0 %910 }
  0xe0   :  { %v1478_v47 = vpop.f32.mrf.mxu0 }
  0xe1   :  { %v726_v20 = vrot.slane %v1478_v47, 4 }
  0xe2   :  { %v1480_v48 = vpop.f32.mrf.mxu0 }
  0xe3   :  { %v1484_v50 = vpop.f32.mrf.mxu1  ;;  %v727_v19 = vrot.slane %v1480_v48, 4 }
  0xe4   :  { %v1482_v49 = vpop.f32.mrf.mxu0  ;;  %v741_v17 = vrot.slane %v1484_v50, 4 }
  0xe5   :  { %v1486_v52 = vpop.f32.mrf.mxu1  ;;  %v755_v15 = vrot.slane %v1482_v49, 4 }
  0xe6   :  { %v295_v51 = vpop.f32.mrf.mxu0  ;;  %v742_v16 = vrot.slane %v1486_v52, 4 }
  0xe7   :  { %v756_v14 = vrot.slane %v295_v51, 4 }
  0xe9   :  { %v435_v53 = vpop.f32.mrf.mxu0 }
  0xea   :  { %v364_v54 = vpop.f32.mrf.mxu1  ;;  %v783_v11 = vrot.slane %v435_v53, 4 }
  0xeb   :  { %v437_v55 = vpop.f32.mrf.mxu0  ;;  %v769_v13 = vrot.slane %v364_v54, 4 }
  0xec   :  { %v366_v56 = vpop.f32.mrf.mxu1  ;;  %v784_v10 = vrot.slane %v437_v55, 4 }
  0xed   :  { %v770_v12 = vrot.slane %v366_v56, 4 }
  0xef   :  { %v577_v57 = vpop.f32.mrf.mxu0 }
  0xf0   :  { %v506_v58 = vpop.f32.mrf.mxu1  ;;  %v811_v7 = vrot.slane %v577_v57, 4 }
  0xf1   :  { %v579_v59 = vpop.f32.mrf.mxu0  ;;  %v797_v9 = vrot.slane %v506_v58, 4 }
  0xf2   :  { %v508_v60 = vpop.f32.mrf.mxu1  ;;  %v812_v6 = vrot.slane %v579_v59, 4 }
  0xf3   :  { %v798_v8 = vrot.slane %v508_v60, 4 }
  0xf5   :  { %v719_v61 = vpop.f32.mrf.mxu0 }
  0xf6   :  { %v648_v62 = vpop.f32.mrf.mxu1  ;;  %v839_v3 = vrot.slane %v719_v61, 4 }
  0xf7   :  { %v721_v63 = vpop.f32.mrf.mxu0  ;;  %v825_v5 = vrot.slane %v648_v62, 4 }
  0xf8   :  { %v650_v1 = vpop.f32.mrf.mxu1  ;;  %v840_v2 = vrot.slane %v721_v63, 4  ;;  %1270 = vmatprep.subr.msk.mxu1 %vm730_vm1, %v721_v63 }
  0xf9   :  { %1271 = vmatpush1.msk.msra.mxu1 %vm730_vm1, %v719_v61  ;;  %v826_v4 = vrot.slane %v650_v1, 4  ;;  %v926_v61 = vpop.permute.xlu0 %925 }
  0xfa   :  { %1272 = vmatprep.subr.msk.mxu1 %vm730_vm1, %v650_v1  ;;  %1288 = vmatprep.subr.msk.mxu0 %vm730_vm1, %v840_v2 }
  0xfb   :  { %1273 = vmatpush1.msk.msra.mxu1 %vm730_vm1, %v648_v62  ;;  %1289 = vmatpush1.msk.msra.mxu0 %vm730_vm1, %v839_v3 }
  0xfc   :  { %1274 = vmatprep.subr.msk.mxu1 %vm730_vm1, %v579_v59  ;;  %1290 = vmatprep.subr.msk.mxu0 %vm730_vm1, %v826_v4 }
  0xfd   :  { %1275 = vmatpush1.msk.msra.mxu1 %vm730_vm1, %v577_v57  ;;  %1291 = vmatpush1.msk.msra.mxu0 %vm730_vm1, %v825_v5 }
  0xfe   :  { %1276 = vmatprep.subr.msk.mxu1 %vm730_vm1, %v508_v60  ;;  %1292 = vmatprep.subr.msk.mxu0 %vm730_vm1, %v812_v6 }
  0xff   :  { %1277 = vmatpush1.msk.msra.mxu1 %vm730_vm1, %v506_v58  ;;  %1293 = vmatpush1.msk.msra.mxu0 %vm730_vm1, %v811_v7 }
 0x100   :  { %1278 = vmatprep.subr.msk.mxu1 %vm730_vm1, %v437_v55  ;;  %1294 = vmatprep.subr.msk.mxu0 %vm730_vm1, %v798_v8 }
 0x101   :  { %1279 = vmatpush1.msk.msra.mxu1 %vm730_vm1, %v435_v53  ;;  %1295 = vmatpush1.msk.msra.mxu0 %vm730_vm1, %v797_v9 }
 0x102   :  { %1280 = vmatprep.subr.msk.mxu1 %vm730_vm1, %v366_v56  ;;  %1296 = vmatprep.subr.msk.mxu0 %vm730_vm1, %v784_v10 }
 0x103   :  { %1281 = vmatpush1.msk.msra.mxu1 %vm730_vm1, %v364_v54  ;;  %1297 = vmatpush1.msk.msra.mxu0 %vm730_vm1, %v783_v11 }
 0x104   :  { %1282 = vmatprep.subr.msk.mxu1 %vm730_vm1, %v295_v51  ;;  %1298 = vmatprep.subr.msk.mxu0 %vm730_vm1, %v770_v12 }
 0x105   :  { %1283 = vmatpush1.msk.msra.mxu1 %vm730_vm1, %v1482_v49  ;;  %1299 = vmatpush1.msk.msra.mxu0 %vm730_vm1, %v769_v13 }
 0x106   :  { %1284 = vmatprep.subr.msk.mxu1 %vm730_vm1, %v1486_v52  ;;  %1300 = vmatprep.subr.msk.mxu0 %vm730_vm1, %v756_v14  ;;  %v936_v14 = vpop.permute.xlu0 %935 }
 0x107   :  { %1285 = vmatpush1.msk.msra.mxu1 %vm730_vm1, %v1484_v50  ;;  %1301 = vmatpush1.msk.msra.mxu0 %vm730_vm1, %v755_v15 }
 0x108   :  { %1286 = vmatprep.subr.msk.mxu1 %vm730_vm1, %v1480_v48  ;;  %1302 = vmatprep.subr.msk.mxu0 %vm730_vm1, %v742_v16 }
 0x109   :  { %1287 = vmatpush1.msk.msra.mxu1 %vm730_vm1, %v1478_v47  ;;  %1303 = vmatpush1.msk.msra.mxu0 %vm730_vm1, %v741_v17 }
 0x10a   :  { %1254 = vmatmul.mubr.msk.f32.vlgmr.msra.gmra.mxu1 %vm943_vm2, %v851_v18  ;;  %1304 = vmatprep.subr.msk.mxu0 %vm730_vm1, %v727_v19 }
 0x10b   :  { %1305 = vmatpush1.msk.msra.mxu0 %vm730_vm1, %v726_v20  ;;  %1038 = vmatprep.mubr.f32.mxu1 %v1387_v0 }
 0x10c   :  { %1262 = vmatmul.mubr.msk.f32.vlgmr.msra.gmra.mxu0 %vm943_vm2, %v851_v18 }
 0x10d   :  { %1151 = vmatprep.mubr.f32.mxu0 %v1387_v0 }
 0x10e   :  { %1255 = vmatmul.mubr.msk.f32.gmra.mxu1 %vm943_vm2, %v852_v21 }
 0x10f   :  { %1044 = vmatprep.mubr.f32.mxu1 %v1387_v0 }
 0x110   :  { %1263 = vmatmul.mubr.msk.f32.gmra.mxu0 %vm943_vm2, %v852_v21 }
 0x111   :  { %1157 = vmatprep.mubr.f32.mxu0 %v1387_v0 }
 0x112   :  { %1256 = vmatmul.mubr.msk.f32.gmra.mxu1 %vm943_vm2, %v853_v22 }
 0x113   :  { %1050 = vmatprep.mubr.f32.mxu1 %v1387_v0 }
 0x114   :  { %1264 = vmatmul.mubr.msk.f32.gmra.mxu0 %vm943_vm2, %v853_v22 }
 0x115   :  { %1163 = vmatprep.mubr.f32.mxu0 %v1387_v0 }
 0x116   :  { %1257 = vmatmul.mubr.msk.f32.gmra.mxu1 %vm943_vm2, %v854_v23 }
 0x117   :  { %1056 = vmatprep.mubr.f32.mxu1 %v1387_v0 }
 0x118   :  { %1265 = vmatmul.mubr.msk.f32.gmra.mxu0 %vm943_vm2, %v854_v23 }
 0x119   :  { %1169 = vmatprep.mubr.f32.mxu0 %v1387_v0 }
 0x11a   :  { %1258 = vmatmul.mubr.msk.f32.gmra.mxu1 %vm943_vm2, %v855_v24 }
 0x11b   :  { %1062 = vmatprep.mubr.f32.mxu1 %v1387_v0 }
 0x11c   :  { %1266 = vmatmul.mubr.msk.f32.gmra.mxu0 %vm943_vm2, %v855_v24 }
 0x11d   :  { %1175 = vmatprep.mubr.f32.mxu0 %v1387_v0 }
 0x11e   :  { %1259 = vmatmul.mubr.msk.f32.gmra.mxu1 %vm943_vm2, %v856_v25 }
 0x11f   :  { %1068 = vmatprep.mubr.f32.mxu1 %v1387_v0 }
 0x120   :  { %1267 = vmatmul.mubr.msk.f32.gmra.mxu0 %vm943_vm2, %v856_v25 }
 0x121   :  { %1181 = vmatprep.mubr.f32.mxu0 %v1387_v0 }
 0x122   :  { %1260 = vmatmul.mubr.msk.f32.gmra.mxu1 %vm943_vm2, %v857_v26 }
 0x123   :  { %1074 = vmatprep.mubr.f32.mxu1 %v1387_v0 }
 0x124   :  { %1268 = vmatmul.mubr.msk.f32.gmra.mxu0 %vm943_vm2, %v857_v26 }
 0x125   :  { %1187 = vmatprep.mubr.f32.mxu0 %v1387_v0  ;;  %v916_v0 = vpop.permute.xlu1 %915 }
 0x126   :  { %1261 = vmatmul.mubr.msk.f32.gmra.mxu1 %vm943_vm2, %v858_v27 }
 0x128   :  { %1269 = vmatmul.mubr.msk.f32.gmra.mxu0 %vm943_vm2, %v858_v27 }
 0x129   :  { %v921_v52 = vpop.permute.xlu1 %920 }
 0x12d   :  { %v931_v5 = vpop.permute.xlu1 %930 }
 0x131   :  { %v941_v23 = vpop.permute.xlu1 %940 }
 0x1ca   :  { %v1034_v29 = vpop.f32.mrf.mxu1 }
 0x1cb   :  { %v1035_v30 = vadd.f32 %v1034_v29, %v906_v28 }
 0x1cc   :  { %v1036_v32 = vpop.f32.mrf.mxu1  ;;  %v1147_v33 = vpop.f32.mrf.mxu0 }
 0x1cd   :  { %v1037_v34 = vadd.f32 %v1036_v32, %v906_v28  ;;  %v1148_v35 = vadd.f32 %v1147_v33, %v906_v28  ;;  %1194 = vst [vmem:[#allocation8] sm:$0xff] %v1035_v30 }
 0x1ce   :  { %v1040_v36 = vpop.f32.mrf.mxu1  ;;  %v1149_v37 = vpop.f32.mrf.mxu0 }
 0x1cf   :  { %1195 = vst [vmem:[#allocation8 + $0x8] sm:$0xff] %v1037_v34  ;;  %1211 = vst [vmem:[#allocation8 + $0x80] sm:$0xff] %v1148_v35  ;;  %v1150_v38 = vadd.f32 %v1149_v37, %v906_v28  ;;  %v1041_v39 = vadd.f32 %v1040_v36, %v911_v31 }
 0x1d0   :  { %v1042_v40 = vpop.f32.mrf.mxu1  ;;  %v1153_v41 = vpop.f32.mrf.mxu0 }
 0x1d1   :  { %1212 = vst [vmem:[#allocation8 + $0x88] sm:$0xff] %v1150_v38  ;;  %v1043_v42 = vadd.f32 %v1042_v40, %v911_v31  ;;  %v1154_v43 = vadd.f32 %v1153_v41, %v911_v31  ;;  %1196 = vst [vmem:[#allocation8 + $0x10] sm:$0xff] %v1041_v39 }
 0x1d2   :  { %v1046_v44 = vpop.f32.mrf.mxu1  ;;  %v1155_v45 = vpop.f32.mrf.mxu0 }
 0x1d3   :  { %1197 = vst [vmem:[#allocation8 + $0x18] sm:$0xff] %v1043_v42  ;;  %1213 = vst [vmem:[#allocation8 + $0x90] sm:$0xff] %v1154_v43  ;;  %v1156_v46 = vadd.f32 %v1155_v45, %v911_v31  ;;  %v1047_v47 = vadd.f32 %v1046_v44, %v916_v0 }
 0x1d4   :  { %v1048_v48 = vpop.f32.mrf.mxu1  ;;  %v1159_v49 = vpop.f32.mrf.mxu0 }
 0x1d5   :  { %1214 = vst [vmem:[#allocation8 + $0x98] sm:$0xff] %v1156_v46  ;;  %1198 = vst [vmem:[#allocation8 + $0x20] sm:$0xff] %v1047_v47  ;;  %v1049_v50 = vadd.f32 %v1048_v48, %v916_v0  ;;  %v1160_v51 = vadd.f32 %v1159_v49, %v916_v0 }
 0x1d6   :  { %v1052_v53 = vpop.f32.mrf.mxu1  ;;  %v1161_v54 = vpop.f32.mrf.mxu0 }
 0x1d7   :  { %1199 = vst [vmem:[#allocation8 + $0x28] sm:$0xff] %v1049_v50  ;;  %1215 = vst [vmem:[#allocation8 + $0xa0] sm:$0xff] %v1160_v51  ;;  %v1162_v55 = vadd.f32 %v1161_v54, %v916_v0  ;;  %v1053_v56 = vadd.f32 %v1052_v53, %v921_v52 }
 0x1d8   :  { %v1054_v57 = vpop.f32.mrf.mxu1  ;;  %v1165_v58 = vpop.f32.mrf.mxu0 }
 0x1d9   :  { %1216 = vst [vmem:[#allocation8 + $0xa8] sm:$0xff] %v1162_v55  ;;  %1200 = vst [vmem:[#allocation8 + $0x30] sm:$0xff] %v1053_v56  ;;  %v1055_v59 = vadd.f32 %v1054_v57, %v921_v52  ;;  %v1166_v60 = vadd.f32 %v1165_v58, %v921_v52 }
 0x1da   :  { %v1058_v62 = vpop.f32.mrf.mxu1  ;;  %v1167_v63 = vpop.f32.mrf.mxu0 }
 0x1db   :  { %1201 = vst [vmem:[#allocation8 + $0x38] sm:$0xff] %v1055_v59  ;;  %1217 = vst [vmem:[#allocation8 + $0xb0] sm:$0xff] %v1166_v60  ;;  %v1168_v1 = vadd.f32 %v1167_v63, %v921_v52  ;;  %v1059_v2 = vadd.f32 %v1058_v62, %v926_v61 }
 0x1dc   :  { %v1060_v3 = vpop.f32.mrf.mxu1  ;;  %v1171_v4 = vpop.f32.mrf.mxu0 }
 0x1dd   :  { %1218 = vst [vmem:[#allocation8 + $0xb8] sm:$0xff] %v1168_v1  ;;  %1202 = vst [vmem:[#allocation8 + $0x40] sm:$0xff] %v1059_v2  ;;  %v1061_v6 = vadd.f32 %v1060_v3, %v926_v61  ;;  %v1172_v7 = vadd.f32 %v1171_v4, %v926_v61 }
 0x1de   :  { %v1064_v8 = vpop.f32.mrf.mxu1  ;;  %v1173_v9 = vpop.f32.mrf.mxu0 }
 0x1df   :  { %1203 = vst [vmem:[#allocation8 + $0x48] sm:$0xff] %v1061_v6  ;;  %1219 = vst [vmem:[#allocation8 + $0xc0] sm:$0xff] %v1172_v7  ;;  %v1065_v10 = vadd.f32 %v1064_v8, %v931_v5  ;;  %v1174_v11 = vadd.f32 %v1173_v9, %v926_v61 }
 0x1e0   :  { %v1066_v12 = vpop.f32.mrf.mxu1  ;;  %v1177_v13 = vpop.f32.mrf.mxu0 }
 0x1e1   :  { %1204 = vst [vmem:[#allocation8 + $0x50] sm:$0xff] %v1065_v10  ;;  %1220 = vst [vmem:[#allocation8 + $0xc8] sm:$0xff] %v1174_v11  ;;  %v1067_v15 = vadd.f32 %v1066_v12, %v931_v5  ;;  %v1178_v16 = vadd.f32 %v1177_v13, %v931_v5 }
 0x1e2   :  { %v1070_v17 = vpop.f32.mrf.mxu1  ;;  %v1179_v18 = vpop.f32.mrf.mxu0 }
 0x1e3   :  { %1205 = vst [vmem:[#allocation8 + $0x58] sm:$0xff] %v1067_v15  ;;  %1221 = vst [vmem:[#allocation8 + $0xd0] sm:$0xff] %v1178_v16  ;;  %v1071_v19 = vadd.f32 %v1070_v17, %v936_v14  ;;  %v1180_v20 = vadd.f32 %v1179_v18, %v931_v5 }
 0x1e4   :  { %v1072_v21 = vpop.f32.mrf.mxu1  ;;  %v1183_v22 = vpop.f32.mrf.mxu0 }
 0x1e5   :  { %1206 = vst [vmem:[#allocation8 + $0x60] sm:$0xff] %v1071_v19  ;;  %1222 = vst [vmem:[#allocation8 + $0xd8] sm:$0xff] %v1180_v20  ;;  %v1073_v24 = vadd.f32 %v1072_v21, %v936_v14  ;;  %v1184_v25 = vadd.f32 %v1183_v22, %v936_v14 }
 0x1e6   :  { %v1076_v26 = vpop.f32.mrf.mxu1  ;;  %v1185_v27 = vpop.f32.mrf.mxu0 }
 0x1e7   :  { %1207 = vst [vmem:[#allocation8 + $0x68] sm:$0xff] %v1073_v24  ;;  %1223 = vst [vmem:[#allocation8 + $0xe0] sm:$0xff] %v1184_v25  ;;  %v1077_v28 = vadd.f32 %v1076_v26, %v941_v23  ;;  %v1186_v29 = vadd.f32 %v1185_v27, %v936_v14 }
 0x1e8   :  { %v1078_v30 = vpop.f32.mrf.mxu1  ;;  %v1189_v31 = vpop.f32.mrf.mxu0 }
 0x1e9   :  { %1208 = vst [vmem:[#allocation8 + $0x70] sm:$0xff] %v1077_v28  ;;  %1224 = vst [vmem:[#allocation8 + $0xe8] sm:$0xff] %v1186_v29  ;;  %v1079_v32 = vadd.f32 %v1078_v30, %v941_v23  ;;  %v1190_v33 = vadd.f32 %v1189_v31, %v941_v23 }
 0x1ea   :  { %v1191_v34 = vpop.f32.mrf.mxu0 }
 0x1eb   :  { %1209 = vst [vmem:[#allocation8 + $0x78] sm:$0xff] %v1079_v32  ;;  %1225 = vst [vmem:[#allocation8 + $0xf0] sm:$0xff] %v1190_v33  ;;  %v1192_v35 = vadd.f32 %v1191_v34, %v941_v23 }
 0x1ed   :  { %1226 = vst [vmem:[#allocation8 + $0xf8] sm:$0xff] %v1192_v35 }
 0x1ee   :  { %1368 = shalt.err (!%p1365_p0)
}
 0x1ef   :  { %s1390_s30 = smov 256   ;;  %s1391_s5 = smov 16  }
 0x1f0   :  { %1238 = dma.vmem_to_hbm [thread:$0]  %s1233_s28, 4096, %s1595_s4, [#allocation5], %s1390_s30, %s1390_s30, %s1391_s5  }
 0x1f1   :  { %1381 = dma.done.wait [#allocation5], 4096  }
 0x1f2   :  { %1382 = vsyncadd [#allocation5], 4294963200 }
 0x1f3   :  { %1242 = vsyncpa [#allocation4], 1 }
 0x1f4   :  { %1243 = vsyncpa [#allocation7], 1 }
 0x1f5   :  { %1244 = vsyncpa [#allocation5], 1 }

</bundles_post_ra>
